<compile_context>
chip_gen: v5e
topology: v5e:2x2
jax: 0.10.0
libtpu: 0.0.40
codegen_flags: <defaults>
</compile_context>

<pallas_src>
import functools

import jax
import jax.numpy as jnp
from jax.experimental import pallas as pl
from jax.experimental.pallas import tpu as pltpu

_EPS = 1e-5


def _bn_relu(y, gamma, beta, *, relu):
    """Training-mode BatchNorm on a (C, M) slab + optional fused ReLU.

    Shifted (centred) two-pass: per-channel mean over the lane axis, then
    mean((y - mean)^2) for the biased variance, folded into one per-channel
    scale/bias mul-add.  gamma/beta are (C, 1).  All math stays f32.
    """
    inv_m = 1.0 / y.shape[1]
    mean = jnp.sum(y, axis=1, keepdims=True) * inv_m
    d = y - mean
    var = jnp.sum(d * d, axis=1, keepdims=True) * inv_m
    scale = gamma * jax.lax.rsqrt(var + _EPS)
    out = d * scale + beta
    return jnp.maximum(out, 0.0) if relu else out


def _bottleneck_kernel(x_ref, w1_ref, w2_ref, w3_ref, masks_ref,
                       g1_ref, b1_ref, g2_ref, b2_ref, g3_ref, b3_ref,
                       o_ref, h1p_ref, *, w, pad_w):
    cmid = w1_ref.shape[0]
    m = x_ref.shape[1]
    mm_dtype = w1_ref.dtype            # MXU operand dtype (bf16 default, f32 opt)

    # ---- conv1 (1x1) + BN + ReLU : (Cmid, Cin) @ (Cin, M) -------------------
    h1 = jnp.dot(w1_ref[...], x_ref[...].astype(mm_dtype),
                 preferred_element_type=jnp.float32)
    h1 = _bn_relu(h1, g1_ref[...], b1_ref[...], relu=True)

    # ---- build the halo: zero pads + conv1 output in the scratch centre -----
    h1p_ref[:, :pad_w] = jnp.zeros((cmid, pad_w), jnp.float32)
    h1p_ref[:, pad_w + m:] = jnp.zeros((cmid, pad_w), jnp.float32)
    h1p_ref[:, pad_w:pad_w + m] = h1

    # ---- conv2 (3x3, stride=1, pad=1) as 9 accumulating matmuls -------------
    # Each tap is a static lane-shifted slice of the padded scratch; boundary
    # validity is a precomputed constant mask (no iota / div / mod in-kernel).
    h2 = jnp.zeros((cmid, m), jnp.float32)
    for kh in range(3):
        dy = kh - 1
        for kw in range(3):
            dx = kw - 1
            t = kh * 3 + kw
            off = dy * w + dx
            tap = h1p_ref[:, pad_w + off: pad_w + off + m]       # (Cmid, M)
            if not (dy == 0 and dx == 0):
                tap = tap * masks_ref[t]                          # (1, M) bcast
            h2 = h2 + jnp.dot(w2_ref[t], tap.astype(mm_dtype),    # (Cmid, Cmid)
                              preferred_element_type=jnp.float32)
    h2 = _bn_relu(h2, g2_ref[...], b2_ref[...], relu=True)

    # ---- conv3 (1x1) + BN ----------------------------------------------------
    h3 = jnp.dot(w3_ref[...], h2.astype(mm_dtype),                # (Cout, Cmid)
                 preferred_element_type=jnp.float32)
    h3 = _bn_relu(h3, g3_ref[...], b3_ref[...], relu=False)

    # ---- identity residual (re-read x from VMEM) + final ReLU ---------------
    o_ref[...] = jnp.maximum(h3 + x_ref[...], 0.0)


def _vmem_budget_bytes():
    """~0.8x of this generation's VMEM capacity (v5e/v6e ~100 MiB, v7x ~50 MiB)."""
    try:
        cap = getattr(pltpu.get_tpu_info(), "vmem_capacity_bytes", None)
        if cap:
            return int(0.8 * cap)
    except Exception:
        pass
    return 64 * 1024 * 1024


def bottleneck_block(x_nchw, params, *, stride=1, matmul_dtype=jnp.bfloat16):
    # TODO(synk): stride > 1 and a user-supplied `downsample` submodule are not
    # implemented; only the identity-residual config (stride=1, downsample=None,
    # in_planes == 4*out_planes) of the PyTorch module is reproduced.
    assert stride == 1, "only stride=1 / identity residual supported"
    n, cin, h, w = x_nchw.shape
    w1, g1, b1 = params["w1"], params["g1"], params["b1"]
    w2, g2, b2 = params["w2"], params["g2"], params["b2"]
    w3, g3, b3 = params["w3"], params["g3"], params["b3"]
    cmid = w1.shape[0]
    cout = w3.shape[0]
    assert cout == cin, "identity residual requires in_planes == 4*out_planes"
    m = n * h * w
    pad_w = ((w + 1 + 127) // 128) * 128          # 128-aligned halo pad

    # TODO(synk): at real ResNet sizes, tile M = N*H*W with a grid (256-multiple
    # tiles, 'parallel' axis for v7x's 2 TensorCores, half-size tile budget on
    # v7x's 64 MiB VMEM) and stream activations as bf16.  Training-mode BN then
    # needs a cross-tile stats phase (partial sum/sumsq on an 'arbitrary' axis +
    # an apply sweep) and halo-overlapped tiles on (N, H) row boundaries; this
    # single VMEM-resident invocation sidesteps both and is sized for small
    # shapes only.

    # NCHW -> channel-major (C, M) slab; OIHW -> matmul-ready weight layouts.
    x_cm = jnp.transpose(x_nchw, (1, 0, 2, 3)).reshape(cin, m).astype(jnp.float32)
    w1_m = w1[:, :, 0, 0].astype(matmul_dtype)                          # (Cmid, Cin)
    w2_t = jnp.transpose(w2, (2, 3, 0, 1)).reshape(9, cmid, cmid)       # (9, Cmid, Cmid)
    w2_t = w2_t.astype(matmul_dtype)
    w3_m = w3[:, :, 0, 0].astype(matmul_dtype)                          # (Cout, Cmid)

    # Precomputed boundary-validity masks for the 9 taps (constant per shape).
    lane = jnp.arange(m, dtype=jnp.int32)
    px = lane % w
    py = (lane // w) % h
    mask_rows = []
    for kh in range(3):
        dy = kh - 1
        for kw in range(3):
            dx = kw - 1
            valid = ((py + dy >= 0) & (py + dy < h)
                     & (px + dx >= 0) & (px + dx < w))
            mask_rows.append(valid)
    masks = jnp.stack(mask_rows, 0).astype(jnp.float32).reshape(9, 1, m)

    flops = 2 * m * (cin * cmid + 9 * cmid * cmid + cmid * cout) \
        + 12 * m * (2 * cmid + cout)
    bytes_accessed = 4 * (cin * m + cout * m + cmid * cin + 9 * cmid * cmid
                          + cout * cmid + 9 * m + 2 * (2 * cmid + cout))
    cost = pl.CostEstimate(flops=int(flops),
                           transcendentals=int(2 * cmid + cout),
                           bytes_accessed=int(bytes_accessed))

    vmem = pl.BlockSpec(memory_space=pltpu.MemorySpace.VMEM)
    kernel = functools.partial(_bottleneck_kernel, w=w, pad_w=pad_w)
    out_cm = pl.pallas_call(
        kernel,
        out_shape=jax.ShapeDtypeStruct((cout, m), jnp.float32),
        in_specs=[vmem] * 11,
        out_specs=vmem,
        scratch_shapes=[pltpu.VMEM((cmid, m + 2 * pad_w), jnp.float32)],
        compiler_params=pltpu.CompilerParams(
            vmem_limit_bytes=_vmem_budget_bytes()),
        cost_estimate=cost,
    )(x_cm, w1_m, w2_t, w3_m, masks,
      g1.reshape(-1, 1).astype(jnp.float32), b1.reshape(-1, 1).astype(jnp.float32),
      g2.reshape(-1, 1).astype(jnp.float32), b2.reshape(-1, 1).astype(jnp.float32),
      g3.reshape(-1, 1).astype(jnp.float32), b3.reshape(-1, 1).astype(jnp.float32))

    return jnp.transpose(out_cm.reshape(cout, n, h, w), (1, 0, 2, 3))   # NCHW


def bottleneck_reference(x, params):
    """Pure-JAX (XLA) reference matching the PyTorch forward (training-mode BN)."""
    def conv(x, w, stride=1, pad=0):
        return jax.lax.conv_general_dilated(
            x, w, (stride, stride), [(pad, pad), (pad, pad)],
            dimension_numbers=("NCHW", "OIHW", "NCHW"))

    def bn(y, g, b):
        mean = y.mean(axis=(0, 2, 3), keepdims=True)
        var = ((y - mean) ** 2).mean(axis=(0, 2, 3), keepdims=True)
        return ((y - mean) / jnp.sqrt(var + _EPS) * g.reshape(1, -1, 1, 1)
                + b.reshape(1, -1, 1, 1))

    out = jax.nn.relu(bn(conv(x, params["w1"]), params["g1"], params["b1"]))
    out = jax.nn.relu(bn(conv(out, params["w2"], 1, 1), params["g2"], params["b2"]))
    out = bn(conv(out, params["w3"]), params["g3"], params["b3"])
    return jax.nn.relu(out + x)


if __name__ == "__main__":
    # Small shapes consistent with the module: in_planes = 4 * out_planes so the
    # identity residual (downsample=None) is valid.  M = N*H*W = 128 -> lane-dense.
    N, in_planes, H, W = 2, 64, 8, 8
    out_planes = 16                     # expansion=4 -> output channels = 64

    key = jax.random.PRNGKey(0)
    ks = jax.random.split(key, 10)
    params = {
        "w1": 0.1 * jax.random.normal(ks[0], (out_planes, in_planes, 1, 1), jnp.float32),
        "g1": 1.0 + 0.1 * jax.random.normal(ks[1], (out_planes,), jnp.float32),
        "b1": 0.1 * jax.random.normal(ks[2], (out_planes,), jnp.float32),
        "w2": 0.1 * jax.random.normal(ks[3], (out_planes, out_planes, 3, 3), jnp.float32),
        "g2": 1.0 + 0.1 * jax.random.normal(ks[4], (out_planes,), jnp.float32),
        "b2": 0.1 * jax.random.normal(ks[5], (out_planes,), jnp.float32),
        "w3": 0.1 * jax.random.normal(ks[6], (4 * out_planes, out_planes, 1, 1), jnp.float32),
        "g3": 1.0 + 0.1 * jax.random.normal(ks[7], (4 * out_planes,), jnp.float32),
        "b3": 0.1 * jax.random.normal(ks[8], (4 * out_planes,), jnp.float32),
    }
    x = jax.random.normal(ks[9], (N, in_planes, H, W), jnp.float32)

    ref = jax.block_until_ready(bottleneck_reference(x, params))

    # Default path: bf16 MXU operands (f32 accumulation / BN math).
    out_bf16 = jax.block_until_ready(bottleneck_block(x, params))
    assert out_bf16.shape == x.shape
    err_bf16 = float(jnp.max(jnp.abs(out_bf16 - ref)))
    assert err_bf16 < 2e-1, f"bf16 max abs error too large: {err_bf16}"

    # f32 MXU operands: tight numerical check of the fused kernel structure.
    out_f32 = jax.block_until_ready(
        bottleneck_block(x, params, matmul_dtype=jnp.float32))
    err_f32 = float(jnp.max(jnp.abs(out_f32 - ref)))
    assert err_f32 < 5e-3, f"f32 max abs error too large: {err_f32}"

    print("KERNEL_OK")
</pallas_src>

<mosaic_0001>
module attributes {stable_mosaic.version = 11 : i64} {
  func.func @_bottleneck_kernel(%arg0: memref<64x128xf32, #tpu.memory_space<vmem>>, %arg1: memref<16x64xbf16, #tpu.memory_space<vmem>>, %arg2: memref<9x16x16xbf16, #tpu.memory_space<vmem>>, %arg3: memref<64x16xbf16, #tpu.memory_space<vmem>>, %arg4: memref<9x1x128xf32, #tpu.memory_space<vmem>>, %arg5: memref<16x1xf32, #tpu.memory_space<vmem>>, %arg6: memref<16x1xf32, #tpu.memory_space<vmem>>, %arg7: memref<16x1xf32, #tpu.memory_space<vmem>>, %arg8: memref<16x1xf32, #tpu.memory_space<vmem>>, %arg9: memref<64x1xf32, #tpu.memory_space<vmem>>, %arg10: memref<64x1xf32, #tpu.memory_space<vmem>>, %arg11: memref<64x128xf32, #tpu.memory_space<vmem>>, %arg12: memref<16x384xf32, #tpu.memory_space<vmem>>) attributes {dimension_semantics = [], scalar_prefetch = 0 : i64, scratch_operands = 1 : i64, tpu.core_type = #tpu.core_type<tc>} {
    %c0 = arith.constant 0 : index
    %c0_0 = arith.constant 0 : index
    %0 = vector.load %arg1[%c0, %c0_0] : memref<16x64xbf16, #tpu.memory_space<vmem>>, vector<16x64xbf16>
    %c0_1 = arith.constant 0 : index
    %c0_2 = arith.constant 0 : index
    %1 = vector.load %arg0[%c0_1, %c0_2] : memref<64x128xf32, #tpu.memory_space<vmem>>, vector<64x128xf32>
    %2 = arith.truncf %1 : vector<64x128xf32> to vector<64x128xbf16>
    %cst = arith.constant dense<0.000000e+00> : vector<16x128xf32>
    %3 = tpu.matmul %0, %2, %cst {dimension_numbers = #tpu.dot_dimension_numbers<[1], [0], [0], [1], [0, 0, 1, 1], [], []>} : vector<16x64xbf16>, vector<64x128xbf16>, vector<16x128xf32> -> vector<16x128xf32>
    %c0_3 = arith.constant 0 : index
    %c0_4 = arith.constant 0 : index
    %4 = vector.load %arg5[%c0_3, %c0_4] : memref<16x1xf32, #tpu.memory_space<vmem>>, vector<16x1xf32>
    %c0_5 = arith.constant 0 : index
    %c0_6 = arith.constant 0 : index
    %5 = vector.load %arg6[%c0_5, %c0_6] : memref<16x1xf32, #tpu.memory_space<vmem>>, vector<16x1xf32>
    %cst_7 = arith.constant dense<0.000000e+00> : vector<16xf32>
    %6 = vector.multi_reduction <add>, %3, %cst_7 [1] : vector<16x128xf32> to vector<16xf32>
    %7 = vector.shape_cast %6 : vector<16xf32> to vector<16x1xf32>
    %cst_8 = arith.constant 7.812500e-03 : f32
    %8 = vector.broadcast %cst_8 : f32 to vector<16x1xf32>
    %9 = arith.mulf %7, %8 : vector<16x1xf32>
    %10 = vector.broadcast %9 : vector<16x1xf32> to vector<16x128xf32>
    %11 = arith.subf %3, %10 : vector<16x128xf32>
    %12 = arith.mulf %11, %11 : vector<16x128xf32>
    %cst_9 = arith.constant dense<0.000000e+00> : vector<16xf32>
    %13 = vector.multi_reduction <add>, %12, %cst_9 [1] : vector<16x128xf32> to vector<16xf32>
    %14 = vector.shape_cast %13 : vector<16xf32> to vector<16x1xf32>
    %cst_10 = arith.constant 7.812500e-03 : f32
    %15 = vector.broadcast %cst_10 : f32 to vector<16x1xf32>
    %16 = arith.mulf %14, %15 : vector<16x1xf32>
    %cst_11 = arith.constant 9.99999974E-6 : f32
    %17 = vector.broadcast %cst_11 : f32 to vector<16x1xf32>
    %18 = arith.addf %16, %17 : vector<16x1xf32>
    %19 = math.rsqrt %18 : vector<16x1xf32>
    %20 = arith.mulf %4, %19 : vector<16x1xf32>
    %21 = vector.broadcast %20 : vector<16x1xf32> to vector<16x128xf32>
    %22 = arith.mulf %11, %21 : vector<16x128xf32>
    %23 = vector.broadcast %5 : vector<16x1xf32> to vector<16x128xf32>
    %24 = arith.addf %22, %23 : vector<16x128xf32>
    %cst_12 = arith.constant 0.000000e+00 : f32
    %25 = vector.broadcast %cst_12 : f32 to vector<16x128xf32>
    %26 = arith.maximumf %24, %25 : vector<16x128xf32>
    %cst_13 = arith.constant 0.000000e+00 : f32
    %27 = vector.broadcast %cst_13 : f32 to vector<16x128xf32>
    %c0_14 = arith.constant 0 : index
    %c0_15 = arith.constant 0 : index
    %28 = vector.load %arg12[%c0_14, %c0_15] : memref<16x384xf32, #tpu.memory_space<vmem>>, vector<16x128xf32>
    tpu.vector_store %arg12[%c0_14, %c0_15], %27 {strides = array<i32>} : memref<16x384xf32, #tpu.memory_space<vmem>>, vector<16x128xf32>,
    %cst_16 = arith.constant 0.000000e+00 : f32
    %29 = vector.broadcast %cst_16 : f32 to vector<16x128xf32>
    %c0_17 = arith.constant 0 : index
    %c256 = arith.constant 256 : index
    %30 = vector.load %arg12[%c0_17, %c256] : memref<16x384xf32, #tpu.memory_space<vmem>>, vector<16x128xf32>
    tpu.vector_store %arg12[%c0_17, %c256], %29 {strides = array<i32>} : memref<16x384xf32, #tpu.memory_space<vmem>>, vector<16x128xf32>,
    %c0_18 = arith.constant 0 : index
    %c128 = arith.constant 128 : index
    %31 = vector.load %arg12[%c0_18, %c128] : memref<16x384xf32, #tpu.memory_space<vmem>>, vector<16x128xf32>
    tpu.vector_store %arg12[%c0_18, %c128], %26 {strides = array<i32>} : memref<16x384xf32, #tpu.memory_space<vmem>>, vector<16x128xf32>,
    %cst_19 = arith.constant 0.000000e+00 : f32
    %32 = vector.broadcast %cst_19 : f32 to vector<16x128xf32>
    %c0_20 = arith.constant 0 : index
    %c119 = arith.constant 119 : index
    %33 = vector.load %arg12[%c0_20, %c119] : memref<16x384xf32, #tpu.memory_space<vmem>>, vector<16x128xf32>
    %c0_21 = arith.constant 0 : index
    %c0_22 = arith.constant 0 : index
    %c0_23 = arith.constant 0 : index
    %34 = vector.load %arg4[%c0_21, %c0_22, %c0_23] : memref<9x1x128xf32, #tpu.memory_space<vmem>>, vector<1x1x128xf32>
    %35 = vector.shape_cast %34 : vector<1x1x128xf32> to vector<1x128xf32>
    %36 = vector.broadcast %35 : vector<1x128xf32> to vector<16x128xf32>
    %37 = arith.mulf %33, %36 : vector<16x128xf32>
    %c0_24 = arith.constant 0 : index
    %c0_25 = arith.constant 0 : index
    %c0_26 = arith.constant 0 : index
    %38 = vector.load %arg2[%c0_24, %c0_25, %c0_26] : memref<9x16x16xbf16, #tpu.memory_space<vmem>>, vector<1x16x16xbf16>
    %39 = vector.shape_cast %38 : vector<1x16x16xbf16> to vector<16x16xbf16>
    %40 = arith.truncf %37 : vector<16x128xf32> to vector<16x128xbf16>
    %cst_27 = arith.constant dense<0.000000e+00> : vector<16x128xf32>
    %41 = tpu.matmul %39, %40, %cst_27 {dimension_numbers = #tpu.dot_dimension_numbers<[1], [0], [0], [1], [0, 0, 1, 1], [], []>} : vector<16x16xbf16>, vector<16x128xbf16>, vector<16x128xf32> -> vector<16x128xf32>
    %42 = arith.addf %32, %41 : vector<16x128xf32>
    %c0_28 = arith.constant 0 : index
    %c120 = arith.constant 120 : index
    %43 = vector.load %arg12[%c0_28, %c120] : memref<16x384xf32, #tpu.memory_space<vmem>>, vector<16x128xf32>
    %c1 = arith.constant 1 : index
    %c0_29 = arith.constant 0 : index
    %c0_30 = arith.constant 0 : index
    %44 = vector.load %arg4[%c1, %c0_29, %c0_30] : memref<9x1x128xf32, #tpu.memory_space<vmem>>, vector<1x1x128xf32>
    %45 = vector.shape_cast %44 : vector<1x1x128xf32> to vector<1x128xf32>
    %46 = vector.broadcast %45 : vector<1x128xf32> to vector<16x128xf32>
    %47 = arith.mulf %43, %46 : vector<16x128xf32>
    %c1_31 = arith.constant 1 : index
    %c0_32 = arith.constant 0 : index
    %c0_33 = arith.constant 0 : index
    %48 = vector.load %arg2[%c1_31, %c0_32, %c0_33] : memref<9x16x16xbf16, #tpu.memory_space<vmem>>, vector<1x16x16xbf16>
    %49 = vector.shape_cast %48 : vector<1x16x16xbf16> to vector<16x16xbf16>
    %50 = arith.truncf %47 : vector<16x128xf32> to vector<16x128xbf16>
    %cst_34 = arith.constant dense<0.000000e+00> : vector<16x128xf32>
    %51 = tpu.matmul %49, %50, %cst_34 {dimension_numbers = #tpu.dot_dimension_numbers<[1], [0], [0], [1], [0, 0, 1, 1], [], []>} : vector<16x16xbf16>, vector<16x128xbf16>, vector<16x128xf32> -> vector<16x128xf32>
    %52 = arith.addf %42, %51 : vector<16x128xf32>
    %c0_35 = arith.constant 0 : index
    %c121 = arith.constant 121 : index
    %53 = vector.load %arg12[%c0_35, %c121] : memref<16x384xf32, #tpu.memory_space<vmem>>, vector<16x128xf32>
    %c2 = arith.constant 2 : index
    %c0_36 = arith.constant 0 : index
    %c0_37 = arith.constant 0 : index
    %54 = vector.load %arg4[%c2, %c0_36, %c0_37] : memref<9x1x128xf32, #tpu.memory_space<vmem>>, vector<1x1x128xf32>
    %55 = vector.shape_cast %54 : vector<1x1x128xf32> to vector<1x128xf32>
    %56 = vector.broadcast %55 : vector<1x128xf32> to vector<16x128xf32>
    %57 = arith.mulf %53, %56 : vector<16x128xf32>
    %c2_38 = arith.constant 2 : index
    %c0_39 = arith.constant 0 : index
    %c0_40 = arith.constant 0 : index
    %58 = vector.load %arg2[%c2_38, %c0_39, %c0_40] : memref<9x16x16xbf16, #tpu.memory_space<vmem>>, vector<1x16x16xbf16>
    %59 = vector.shape_cast %58 : vector<1x16x16xbf16> to vector<16x16xbf16>
    %60 = arith.truncf %57 : vector<16x128xf32> to vector<16x128xbf16>
    %cst_41 = arith.constant dense<0.000000e+00> : vector<16x128xf32>
    %61 = tpu.matmul %59, %60, %cst_41 {dimension_numbers = #tpu.dot_dimension_numbers<[1], [0], [0], [1], [0, 0, 1, 1], [], []>} : vector<16x16xbf16>, vector<16x128xbf16>, vector<16x128xf32> -> vector<16x128xf32>
    %62 = arith.addf %52, %61 : vector<16x128xf32>
    %c0_42 = arith.constant 0 : index
    %c127 = arith.constant 127 : index
    %63 = vector.load %arg12[%c0_42, %c127] : memref<16x384xf32, #tpu.memory_space<vmem>>, vector<16x128xf32>
    %c3 = arith.constant 3 : index
    %c0_43 = arith.constant 0 : index
    %c0_44 = arith.constant 0 : index
    %64 = vector.load %arg4[%c3, %c0_43, %c0_44] : memref<9x1x128xf32, #tpu.memory_space<vmem>>, vector<1x1x128xf32>
    %65 = vector.shape_cast %64 : vector<1x1x128xf32> to vector<1x128xf32>
    %66 = vector.broadcast %65 : vector<1x128xf32> to vector<16x128xf32>
    %67 = arith.mulf %63, %66 : vector<16x128xf32>
    %c3_45 = arith.constant 3 : index
    %c0_46 = arith.constant 0 : index
    %c0_47 = arith.constant 0 : index
    %68 = vector.load %arg2[%c3_45, %c0_46, %c0_47] : memref<9x16x16xbf16, #tpu.memory_space<vmem>>, vector<1x16x16xbf16>
    %69 = vector.shape_cast %68 : vector<1x16x16xbf16> to vector<16x16xbf16>
    %70 = arith.truncf %67 : vector<16x128xf32> to vector<16x128xbf16>
    %cst_48 = arith.constant dense<0.000000e+00> : vector<16x128xf32>
    %71 = tpu.matmul %69, %70, %cst_48 {dimension_numbers = #tpu.dot_dimension_numbers<[1], [0], [0], [1], [0, 0, 1, 1], [], []>} : vector<16x16xbf16>, vector<16x128xbf16>, vector<16x128xf32> -> vector<16x128xf32>
    %72 = arith.addf %62, %71 : vector<16x128xf32>
    %c0_49 = arith.constant 0 : index
    %c128_50 = arith.constant 128 : index
    %73 = vector.load %arg12[%c0_49, %c128_50] : memref<16x384xf32, #tpu.memory_space<vmem>>, vector<16x128xf32>
    %c4 = arith.constant 4 : index
    %c0_51 = arith.constant 0 : index
    %c0_52 = arith.constant 0 : index
    %74 = vector.load %arg2[%c4, %c0_51, %c0_52] : memref<9x16x16xbf16, #tpu.memory_space<vmem>>, vector<1x16x16xbf16>
    %75 = vector.shape_cast %74 : vector<1x16x16xbf16> to vector<16x16xbf16>
    %76 = arith.truncf %73 : vector<16x128xf32> to vector<16x128xbf16>
    %cst_53 = arith.constant dense<0.000000e+00> : vector<16x128xf32>
    %77 = tpu.matmul %75, %76, %cst_53 {dimension_numbers = #tpu.dot_dimension_numbers<[1], [0], [0], [1], [0, 0, 1, 1], [], []>} : vector<16x16xbf16>, vector<16x128xbf16>, vector<16x128xf32> -> vector<16x128xf32>
    %78 = arith.addf %72, %77 : vector<16x128xf32>
    %c0_54 = arith.constant 0 : index
    %c129 = arith.constant 129 : index
    %79 = vector.load %arg12[%c0_54, %c129] : memref<16x384xf32, #tpu.memory_space<vmem>>, vector<16x128xf32>
    %c5 = arith.constant 5 : index
    %c0_55 = arith.constant 0 : index
    %c0_56 = arith.constant 0 : index
    %80 = vector.load %arg4[%c5, %c0_55, %c0_56] : memref<9x1x128xf32, #tpu.memory_space<vmem>>, vector<1x1x128xf32>
    %81 = vector.shape_cast %80 : vector<1x1x128xf32> to vector<1x128xf32>
    %82 = vector.broadcast %81 : vector<1x128xf32> to vector<16x128xf32>
    %83 = arith.mulf %79, %82 : vector<16x128xf32>
    %c5_57 = arith.constant 5 : index
    %c0_58 = arith.constant 0 : index
    %c0_59 = arith.constant 0 : index
    %84 = vector.load %arg2[%c5_57, %c0_58, %c0_59] : memref<9x16x16xbf16, #tpu.memory_space<vmem>>, vector<1x16x16xbf16>
    %85 = vector.shape_cast %84 : vector<1x16x16xbf16> to vector<16x16xbf16>
    %86 = arith.truncf %83 : vector<16x128xf32> to vector<16x128xbf16>
    %cst_60 = arith.constant dense<0.000000e+00> : vector<16x128xf32>
    %87 = tpu.matmul %85, %86, %cst_60 {dimension_numbers = #tpu.dot_dimension_numbers<[1], [0], [0], [1], [0, 0, 1, 1], [], []>} : vector<16x16xbf16>, vector<16x128xbf16>, vector<16x128xf32> -> vector<16x128xf32>
    %88 = arith.addf %78, %87 : vector<16x128xf32>
    %c0_61 = arith.constant 0 : index
    %c135 = arith.constant 135 : index
    %89 = vector.load %arg12[%c0_61, %c135] : memref<16x384xf32, #tpu.memory_space<vmem>>, vector<16x128xf32>
    %c6 = arith.constant 6 : index
    %c0_62 = arith.constant 0 : index
    %c0_63 = arith.constant 0 : index
    %90 = vector.load %arg4[%c6, %c0_62, %c0_63] : memref<9x1x128xf32, #tpu.memory_space<vmem>>, vector<1x1x128xf32>
    %91 = vector.shape_cast %90 : vector<1x1x128xf32> to vector<1x128xf32>
    %92 = vector.broadcast %91 : vector<1x128xf32> to vector<16x128xf32>
    %93 = arith.mulf %89, %92 : vector<16x128xf32>
    %c6_64 = arith.constant 6 : index
    %c0_65 = arith.constant 0 : index
    %c0_66 = arith.constant 0 : index
    %94 = vector.load %arg2[%c6_64, %c0_65, %c0_66] : memref<9x16x16xbf16, #tpu.memory_space<vmem>>, vector<1x16x16xbf16>
    %95 = vector.shape_cast %94 : vector<1x16x16xbf16> to vector<16x16xbf16>
    %96 = arith.truncf %93 : vector<16x128xf32> to vector<16x128xbf16>
    %cst_67 = arith.constant dense<0.000000e+00> : vector<16x128xf32>
    %97 = tpu.matmul %95, %96, %cst_67 {dimension_numbers = #tpu.dot_dimension_numbers<[1], [0], [0], [1], [0, 0, 1, 1], [], []>} : vector<16x16xbf16>, vector<16x128xbf16>, vector<16x128xf32> -> vector<16x128xf32>
    %98 = arith.addf %88, %97 : vector<16x128xf32>
    %c0_68 = arith.constant 0 : index
    %c136 = arith.constant 136 : index
    %99 = vector.load %arg12[%c0_68, %c136] : memref<16x384xf32, #tpu.memory_space<vmem>>, vector<16x128xf32>
    %c7 = arith.constant 7 : index
    %c0_69 = arith.constant 0 : index
    %c0_70 = arith.constant 0 : index
    %100 = vector.load %arg4[%c7, %c0_69, %c0_70] : memref<9x1x128xf32, #tpu.memory_space<vmem>>, vector<1x1x128xf32>
    %101 = vector.shape_cast %100 : vector<1x1x128xf32> to vector<1x128xf32>
    %102 = vector.broadcast %101 : vector<1x128xf32> to vector<16x128xf32>
    %103 = arith.mulf %99, %102 : vector<16x128xf32>
    %c7_71 = arith.constant 7 : index
    %c0_72 = arith.constant 0 : index
    %c0_73 = arith.constant 0 : index
    %104 = vector.load %arg2[%c7_71, %c0_72, %c0_73] : memref<9x16x16xbf16, #tpu.memory_space<vmem>>, vector<1x16x16xbf16>
    %105 = vector.shape_cast %104 : vector<1x16x16xbf16> to vector<16x16xbf16>
    %106 = arith.truncf %103 : vector<16x128xf32> to vector<16x128xbf16>
    %cst_74 = arith.constant dense<0.000000e+00> : vector<16x128xf32>
    %107 = tpu.matmul %105, %106, %cst_74 {dimension_numbers = #tpu.dot_dimension_numbers<[1], [0], [0], [1], [0, 0, 1, 1], [], []>} : vector<16x16xbf16>, vector<16x128xbf16>, vector<16x128xf32> -> vector<16x128xf32>
    %108 = arith.addf %98, %107 : vector<16x128xf32>
    %c0_75 = arith.constant 0 : index
    %c137 = arith.constant 137 : index
    %109 = vector.load %arg12[%c0_75, %c137] : memref<16x384xf32, #tpu.memory_space<vmem>>, vector<16x128xf32>
    %c8 = arith.constant 8 : index
    %c0_76 = arith.constant 0 : index
    %c0_77 = arith.constant 0 : index
    %110 = vector.load %arg4[%c8, %c0_76, %c0_77] : memref<9x1x128xf32, #tpu.memory_space<vmem>>, vector<1x1x128xf32>
    %111 = vector.shape_cast %110 : vector<1x1x128xf32> to vector<1x128xf32>
    %112 = vector.broadcast %111 : vector<1x128xf32> to vector<16x128xf32>
    %113 = arith.mulf %109, %112 : vector<16x128xf32>
    %c8_78 = arith.constant 8 : index
    %c0_79 = arith.constant 0 : index
    %c0_80 = arith.constant 0 : index
    %114 = vector.load %arg2[%c8_78, %c0_79, %c0_80] : memref<9x16x16xbf16, #tpu.memory_space<vmem>>, vector<1x16x16xbf16>
    %115 = vector.shape_cast %114 : vector<1x16x16xbf16> to vector<16x16xbf16>
    %116 = arith.truncf %113 : vector<16x128xf32> to vector<16x128xbf16>
    %cst_81 = arith.constant dense<0.000000e+00> : vector<16x128xf32>
    %117 = tpu.matmul %115, %116, %cst_81 {dimension_numbers = #tpu.dot_dimension_numbers<[1], [0], [0], [1], [0, 0, 1, 1], [], []>} : vector<16x16xbf16>, vector<16x128xbf16>, vector<16x128xf32> -> vector<16x128xf32>
    %118 = arith.addf %108, %117 : vector<16x128xf32>
    %c0_82 = arith.constant 0 : index
    %c0_83 = arith.constant 0 : index
    %119 = vector.load %arg7[%c0_82, %c0_83] : memref<16x1xf32, #tpu.memory_space<vmem>>, vector<16x1xf32>
    %c0_84 = arith.constant 0 : index
    %c0_85 = arith.constant 0 : index
    %120 = vector.load %arg8[%c0_84, %c0_85] : memref<16x1xf32, #tpu.memory_space<vmem>>, vector<16x1xf32>
    %cst_86 = arith.constant dense<0.000000e+00> : vector<16xf32>
    %121 = vector.multi_reduction <add>, %118, %cst_86 [1] : vector<16x128xf32> to vector<16xf32>
    %122 = vector.shape_cast %121 : vector<16xf32> to vector<16x1xf32>
    %cst_87 = arith.constant 7.812500e-03 : f32
    %123 = vector.broadcast %cst_87 : f32 to vector<16x1xf32>
    %124 = arith.mulf %122, %123 : vector<16x1xf32>
    %125 = vector.broadcast %124 : vector<16x1xf32> to vector<16x128xf32>
    %126 = arith.subf %118, %125 : vector<16x128xf32>
    %127 = arith.mulf %126, %126 : vector<16x128xf32>
    %cst_88 = arith.constant dense<0.000000e+00> : vector<16xf32>
    %128 = vector.multi_reduction <add>, %127, %cst_88 [1] : vector<16x128xf32> to vector<16xf32>
    %129 = vector.shape_cast %128 : vector<16xf32> to vector<16x1xf32>
    %cst_89 = arith.constant 7.812500e-03 : f32
    %130 = vector.broadcast %cst_89 : f32 to vector<16x1xf32>
    %131 = arith.mulf %129, %130 : vector<16x1xf32>
    %cst_90 = arith.constant 9.99999974E-6 : f32
    %132 = vector.broadcast %cst_90 : f32 to vector<16x1xf32>
    %133 = arith.addf %131, %132 : vector<16x1xf32>
    %134 = math.rsqrt %133 : vector<16x1xf32>
    %135 = arith.mulf %119, %134 : vector<16x1xf32>
    %136 = vector.broadcast %135 : vector<16x1xf32> to vector<16x128xf32>
    %137 = arith.mulf %126, %136 : vector<16x128xf32>
    %138 = vector.broadcast %120 : vector<16x1xf32> to vector<16x128xf32>
    %139 = arith.addf %137, %138 : vector<16x128xf32>
    %cst_91 = arith.constant 0.000000e+00 : f32
    %140 = vector.broadcast %cst_91 : f32 to vector<16x128xf32>
    %141 = arith.maximumf %139, %140 : vector<16x128xf32>
    %c0_92 = arith.constant 0 : index
    %c0_93 = arith.constant 0 : index
    %142 = vector.load %arg3[%c0_92, %c0_93] : memref<64x16xbf16, #tpu.memory_space<vmem>>, vector<64x16xbf16>
    %143 = arith.truncf %141 : vector<16x128xf32> to vector<16x128xbf16>
    %cst_94 = arith.constant dense<0.000000e+00> : vector<64x128xf32>
    %144 = tpu.matmul %142, %143, %cst_94 {dimension_numbers = #tpu.dot_dimension_numbers<[1], [0], [0], [1], [0, 0, 1, 1], [], []>} : vector<64x16xbf16>, vector<16x128xbf16>, vector<64x128xf32> -> vector<64x128xf32>
    %c0_95 = arith.constant 0 : index
    %c0_96 = arith.constant 0 : index
    %145 = vector.load %arg9[%c0_95, %c0_96] : memref<64x1xf32, #tpu.memory_space<vmem>>, vector<64x1xf32>
    %c0_97 = arith.constant 0 : index
    %c0_98 = arith.constant 0 : index
    %146 = vector.load %arg10[%c0_97, %c0_98] : memref<64x1xf32, #tpu.memory_space<vmem>>, vector<64x1xf32>
    %cst_99 = arith.constant dense<0.000000e+00> : vector<64xf32>
    %147 = vector.multi_reduction <add>, %144, %cst_99 [1] : vector<64x128xf32> to vector<64xf32>
    %148 = vector.shape_cast %147 : vector<64xf32> to vector<64x1xf32>
    %cst_100 = arith.constant 7.812500e-03 : f32
    %149 = vector.broadcast %cst_100 : f32 to vector<64x1xf32>
    %150 = arith.mulf %148, %149 : vector<64x1xf32>
    %151 = vector.broadcast %150 : vector<64x1xf32> to vector<64x128xf32>
    %152 = arith.subf %144, %151 : vector<64x128xf32>
    %153 = arith.mulf %152, %152 : vector<64x128xf32>
    %cst_101 = arith.constant dense<0.000000e+00> : vector<64xf32>
    %154 = vector.multi_reduction <add>, %153, %cst_101 [1] : vector<64x128xf32> to vector<64xf32>
    %155 = vector.shape_cast %154 : vector<64xf32> to vector<64x1xf32>
    %cst_102 = arith.constant 7.812500e-03 : f32
    %156 = vector.broadcast %cst_102 : f32 to vector<64x1xf32>
    %157 = arith.mulf %155, %156 : vector<64x1xf32>
    %cst_103 = arith.constant 9.99999974E-6 : f32
    %158 = vector.broadcast %cst_103 : f32 to vector<64x1xf32>
    %159 = arith.addf %157, %158 : vector<64x1xf32>
    %160 = math.rsqrt %159 : vector<64x1xf32>
    %161 = arith.mulf %145, %160 : vector<64x1xf32>
    %162 = vector.broadcast %161 : vector<64x1xf32> to vector<64x128xf32>
    %163 = arith.mulf %152, %162 : vector<64x128xf32>
    %164 = vector.broadcast %146 : vector<64x1xf32> to vector<64x128xf32>
    %165 = arith.addf %163, %164 : vector<64x128xf32>
    %c0_104 = arith.constant 0 : index
    %c0_105 = arith.constant 0 : index
    %166 = vector.load %arg0[%c0_104, %c0_105] : memref<64x128xf32, #tpu.memory_space<vmem>>, vector<64x128xf32>
    %167 = arith.addf %165, %166 : vector<64x128xf32>
    %cst_106 = arith.constant 0.000000e+00 : f32
    %168 = vector.broadcast %cst_106 : f32 to vector<64x128xf32>
    %169 = arith.maximumf %167, %168 : vector<64x128xf32>
    %c0_107 = arith.constant 0 : index
    %c0_108 = arith.constant 0 : index
    %170 = vector.load %arg11[%c0_107, %c0_108] : memref<64x128xf32, #tpu.memory_space<vmem>>, vector<64x128xf32>
    tpu.vector_store %arg11[%c0_107, %c0_108], %169 {strides = array<i32>} : memref<64x128xf32, #tpu.memory_space<vmem>>, vector<64x128xf32>,
    return
  }
}

</mosaic_0001>

<bundles_post_ra>
// kernel: tpu_custom_call.1
= control target key start
LH: loop header
LB: loop body
LE: loop exit
PB: predicated region body
PF: predicated region fallthrough
CT: control target
= control target key end

     0   :  { %s1585_s0 = inlined_call_operand.vmem [shape: f32[64,128], index: 0, kind: input, shape index: {}]   ;;  %s1586_s1 = inlined_call_operand.vmem [shape: bf16[16,64], index: 1, kind: input, shape index: {}]   ;;  %s1587_s2 = inlined_call_operand.vmem [shape: bf16[9,16,16], index: 2, kind: input, shape index: {}]   ;;  %s1588_s3 = inlined_call_operand.vmem [shape: bf16[64,16], index: 3, kind: input, shape index: {}]   ;;  %s1589_s4 = inlined_call_operand.vmem [shape: f32[9,1,128], index: 4, kind: input, shape index: {}]   ;;  %s1590_s5 = inlined_call_operand.vmem [shape: f32[16,1], index: 5, kind: input, shape index: {}]   ;;  %s1591_s6 = inlined_call_operand.vmem [shape: f32[16,1], index: 6, kind: input, shape index: {}]   ;;  %s1592_s7 = inlined_call_operand.vmem [shape: f32[16,1], index: 7, kind: input, shape index: {}]   ;;  %s1593_s8 = inlined_call_operand.vmem [shape: f32[16,1], index: 8, kind: input, shape index: {}]   ;;  %s1594_s9 = inlined_call_operand.vmem [shape: f32[64,1], index: 9, kind: input, shape index: {}]   ;;  %s1595_s10 = inlined_call_operand.vmem [shape: f32[64,1], index: 10, kind: input, shape index: {}]   ;;  %s1596_s11 = inlined_call_operand.hbm [shape: f32[64,128], index: 11, kind: output, shape index: {}]  }
   0x1   :  { %v48_v0 = vld [vmem:[%s1585_s0 + $0x30] sm:$0xff]  ;;  %v49_v1 = vld [vmem:[%s1585_s0 + $0x38] sm:$0xff]  ;;  %v46_v2 = vld [vmem:[%s1585_s0 + $0x20] sm:$0xff] }
   0x2   :  { %v53_v3 = vpack.c.bf16 %v49_v1, %v48_v0  ;;  %v47_v4 = vld [vmem:[%s1585_s0 + $0x28] sm:$0xff]  ;;  %v44_v5 = vld [vmem:[%s1585_s0 + $0x10] sm:$0xff]  ;;  %v45_v6 = vld [vmem:[%s1585_s0 + $0x18] sm:$0xff] }
   0x3   :  { %v52_v7 = vpack.c.bf16 %v47_v4, %v46_v2 }
   0x4   :  { %67 = vmatpush.bf16.msra.mxu0 %v53_v3 }
   0x5   :  { %16 = vsyncpa [#allocation4], 0  ;;  %v51_v8 = vpack.c.bf16 %v45_v6, %v44_v5  ;;  %v42_v9 = vld [vmem:[%s1585_s0] sm:$0xff]  ;;  %v43_v10 = vld [vmem:[%s1585_s0 + $0x8] sm:$0xff]  ;;  %vm59_vm0 = vcmask 523264   ;;  %v1218_v15 = vmov 0  }
   0x6   :  { %v50_v11 = vpack.c.bf16 %v43_v10, %v42_v9  ;;  %v1131_v12 = vld [vmem:[%s1586_s1] sm:$0xff]  ;;  %1158 = vset.pattern.permute.xlu1 %v1218_v15  ;;  %1157 = vset.pattern.permute.xlu0 %v1218_v15  ;;  %v80_v24 = vld [vmem:[%s1591_s6 + $0x8] sm:$0xff]  ;;  %s1219_s21 = smov 7   ;;  %s1220_s27 = smov 120   ;;  %vm198_vm7 = vcmask 64512   ;;  %vm201_vm8 = vcmask 130048  }
   0x7   :  { %1159 = vset.pattern.permute.xlu2 %v1218_v15  ;;  %v79_v25 = vld [vmem:[%s1591_s6] sm:$0xff]  ;;  %v78_v47 = vld [vmem:[%s1590_s5 + $0x8] sm:$0xff]  ;;  %s1221_s30 = smov 119   ;;  %s1222_s13 = smov 127   ;;  %vm230_vm9 = vcmask 72704   ;;  %vm326_vm10 = vcmask 7168  }
   0x8   :  { %68 = vmatpush.bf16.msra.mxu0 %v52_v7  ;;  %v1160_v26 = vld [vmem:[%s1589_s4 + $0x6] ss:$0 sm:$0xff]  ;;  %v1161_v51 = vld [vmem:[%s1589_s4 + $0x1] ss:$0 sm:$0xff]  ;;  %v1162_v52 = vld [vmem:[%s1589_s4] ss:$0 sm:$0xff] }
   0x9   :  { %v77_v40 = vld [vmem:[%s1590_s5] sm:$0xff]  ;;  %s1223_s1 = smov 121   ;;  %s1224_s18 = smov 1   ;;  %v1166_v56 = vld [vmem:[%s1589_s4 + $0x8] ss:$0 sm:$0xff]  ;;  %vm456_vm11 = vcmask 990208  }
   0xa   :  { %v1163_v53 = vld [vmem:[%s1589_s4 + $0x3] ss:$0 sm:$0xff]  ;;  %v1164_v54 = vld [vmem:[%s1589_s4 + $0x2] ss:$0 sm:$0xff]  ;;  %v1165_v55 = vld [vmem:[%s1589_s4 + $0x5] ss:$0 sm:$0xff] }
   0xb   :  { %s1225_s6 = smov 9   ;;  %s1226_s22 = smov 8   ;;  %vm277_vm12 = vcmask 56320   ;;  %vm407_vm13 = vcmask 1039360   ;;  %vm554_vm14 = vcmask 973824   ;;  %vm505_vm15 = vcmask 982016  }
   0xc   :  { %69 = vmatpush.bf16.msra.mxu0 %v51_v8  ;;  %s1227_s28 = smov [#allocation3]   ;;  %s1228_s5 = smov 128  }
   0xd   :  { %s1024_s29 = sshll.u32 %s1227_s28, 4  ;;  %s1025_s29 = int_to_ptr.vmem [resolvable:$true] %s1024_s29 }
  0x10   :  { %70 = vmatpush.bf16.msra.mxu0 %v50_v11 }
  0x13   :  { %1042 = vmatmul.msk.bf16.vlgmr.msra.gmra.mxu0 %vm59_vm0, %v1131_v12 }
  0x90   :  { %v72_v13 = vpop.f32.mrf.mxu0 }
  0x91   :  { %81 = vadd.xlane.f32.xlu0 %v72_v13 }
  0x98   :  { %v74_v14 = vpop.f32.mrf.mxu0 }
  0x99   :  { %83 = vadd.xlane.f32.xlu0 %v74_v14 }
  0xad   :  { %135 = vperm.xlu0 %1157, %v79_v25  }
 0x104   :  { %v82_v16 = vpop.xlane.xlu0 %81 }
 0x105   :  { %v85_v17 = vmul.f32 0.0078125, %v82_v16 }
 0x107   :  { %v1316_v18 = vsub.f32 %v72_v13, %v85_v17  ;;  %v1167_v13 = vld [vmem:[%s1589_s4 + $0x7] ss:$0 sm:$0xff] }
 0x109   :  { %v89_v19 = vmul.f32 %v1316_v18, %v1316_v18 }
 0x10b   :  { %91 = vadd.xlane.f32.xlu1 %v89_v19 }
 0x10c   :  { %v84_v20 = vpop.xlane.xlu0 %83 }
 0x10d   :  { %v86_v21 = vmul.f32 0.0078125, %v84_v20 }
 0x10f   :  { %v1320_v22 = vsub.f32 %v74_v14, %v86_v21 }
 0x111   :  { %v90_v23 = vmul.f32 %v1320_v22, %v1320_v22 }
 0x113   :  { %93 = vadd.xlane.f32.xlu1 %v90_v23 }
 0x11f   :  { %v136_v59 = vpop.permute.xlu0 %135 }
 0x12c   :  { %140 = vperm.xlu1 %1158, %v80_v24  }
 0x134   :  { %433 = vrot.lane.b32.xlu1 %v1160_v26, %s1219_s21 }
 0x17e   :  { %v92_v27 = vpop.xlane.xlu1 %91 }
 0x17f   :  { %v95_v28 = vmul.f32 0.0078125, %v92_v27 }
 0x181   :  { %v97_v29 = vadd.f32 1e-05, %v95_v28 }
 0x183   :  { %1168 = vrsqrt.f32 %v97_v29  ;;  %vm105_vm2 = vweird.f32 %v97_v29 }
 0x186   :  { %v94_v30 = vpop.xlane.xlu1 %93 }
 0x187   :  { %v96_v31 = vmul.f32 0.0078125, %v94_v30 }
 0x189   :  { %v1169_v32 = vpop.eup %1168  ;;  %v98_v33 = vadd.f32 1e-05, %v96_v31 }
 0x18a   :  { %v100_v34 = vmul.f32 %v1169_v32, %v97_v29  ;;  %vm106_vm1 = vweird.f32 %v1169_v32 }
 0x18b   :  { %1170 = vrsqrt.f32 %v98_v33  ;;  %vm107_vm3 = vmor %vm105_vm2, %vm106_vm1  ;;  %vm115_vm5 = vweird.f32 %v98_v33 }
 0x18c   :  { %v101_v35 = vmul.f32 %v1169_v32, %v100_v34 }
 0x18e   :  { %v102_v36 = vmul.f32 0.5, %v101_v35 }
 0x190   :  { %v103_v37 = vsub.f32 1.5, %v102_v36 }
 0x191   :  { %v1171_v38 = vpop.eup %1170 }
 0x192   :  { %v110_v39 = vmul.f32 %v1171_v38, %v98_v33  ;;  %v104_v41 = vmul.f32 %v1169_v32, %v103_v37  ;;  %vm116_vm4 = vweird.f32 %v1171_v38 }
 0x193   :  { %vm117_vm6 = vmor %vm115_vm5, %vm116_vm4 }
 0x194   :  { %v111_v42 = vmul.f32 %v1171_v38, %v110_v39  ;;  %v108_v43 = vsel %vm107_vm3, %v1169_v32, %v104_v41 }
 0x195   :  { %v119_v44 = vmul.f32 %v108_v43, %v77_v40 }
 0x196   :  { %v112_v45 = vmul.f32 0.5, %v111_v42 }
 0x197   :  { %123 = vperm.xlu2 %1159, %v119_v44  }
 0x198   :  { %v113_v46 = vsub.f32 1.5, %v112_v45 }
 0x19a   :  { %v114_v48 = vmul.f32 %v1171_v38, %v113_v46 }
 0x19c   :  { %v118_v49 = vsel %vm117_vm6, %v1171_v38, %v114_v48 }
 0x19d   :  { %v120_v50 = vmul.f32 %v118_v49, %v78_v47  ;;  %v1133_v49 = vld [vmem:[%s1587_s2 + $0x8] sm:$0xff] }
 0x19e   :  { %v141_v62 = vpop.permute.xlu1 %140 }
 0x19f   :  { %128 = vperm.xlu2 %1159, %v120_v50  }
 0x1a7   :  { %175 = vrot.lane.b32.xlu2 %v1161_v51, %s1220_s27 }
 0x1af   :  { %160 = vrot.lane.b32.xlu2 %v1162_v52, %s1221_s30 }
 0x1b7   :  { %303 = vrot.lane.b32.xlu2 %v1163_v53, %s1222_s13 }
 0x1bf   :  { %254 = vrot.lane.b32.xlu2 %v1164_v54, %s1223_s1 }
 0x1c7   :  { %384 = vrot.lane.b32.xlu2 %v1165_v55, %s1224_s18 }
 0x1cf   :  { %531 = vrot.lane.b32.xlu2 %v1166_v56, %s1225_s6 }
 0x1f1   :  { %v124_v57 = vpop.permute.xlu2 %123 }
 0x1f2   :  { %v131_v58 = vmul.f32 %v124_v57, %v1316_v18 }
 0x1f4   :  { %v143_v63 = vadd.f32 %v136_v59, %v131_v58  ;;  %v1132_v58 = vld [vmem:[%s1587_s2] sm:$0xff] }
 0x1f6   :  { %v1365_v1 = vmax.f32 %v143_v63, 0.0 }
 0x1f9   :  { %v129_v60 = vpop.permute.xlu2 %128 }
 0x1fa   :  { %v132_v61 = vmul.f32 %v129_v60, %v1320_v22  ;;  %v434_v22 = vpop.permute.xlu1 %433 }
 0x1fb   :  { %v436_v25 = vmul.f32 %v434_v22, %v1365_v1  ;;  %v437_v32 = vmul.f32 0.0, %v434_v22 }
 0x1fc   :  { %v144_v0 = vadd.f32 %v141_v62, %v132_v61 }
 0x1fd   :  { %v444_v37 = vpack.c.bf16 %v437_v32, %v437_v32 }
 0x1fe   :  { %v1367_v2 = vmax.f32 %v144_v0, 0.0 }
 0x200   :  { %v438_v23 = vmul.f32 %v434_v22, %v1367_v2  ;;  %v351_v53 = vpack.c.bf16 %v1367_v2, %v1365_v1 }
 0x201   :  { %v176_v3 = vpop.permute.xlu2 %175 }
 0x202   :  { %v178_v4 = vmul.f32 0.0, %v176_v3  ;;  %v179_v5 = vmul.f32 %v176_v3, %v1365_v1  ;;  %v181_v6 = vmul.f32 %v176_v3, %v1367_v2  ;;  %v443_v30 = vpack.c.bf16 %v438_v23, %v436_v25 }
 0x204   :  { %v185_v7 = vpack.c.bf16 %v178_v4, %v178_v4  ;;  %v186_v8 = vpack.c.bf16 %v181_v6, %v179_v5 }
 0x206   :  { %194 = vrot.lane.b32.xlu1 %v185_v7, %s1226_s22  ;;  %196 = vrot.lane.b32.xlu0 %v186_v8, %s1226_s22  ;;  %v1134_v7 = vld [vmem:[%s1587_s2 + $0x10] sm:$0xff]  ;;  %v1136_v8 = vld [vmem:[%s1587_s2 + $0x20] sm:$0xff] }
 0x209   :  { %v161_v9 = vpop.permute.xlu2 %160 }
 0x20a   :  { %v163_v10 = vmul.f32 0.0, %v161_v9  ;;  %v164_v11 = vmul.f32 %v161_v9, %v1365_v1  ;;  %v166_v12 = vmul.f32 %v161_v9, %v1367_v2 }
 0x20c   :  { %v169_v14 = vpack.c.bf16 %v163_v10, %v163_v10  ;;  %v170_v15 = vpack.c.bf16 %v166_v12, %v164_v11  ;;  %v1138_v12 = vld [vmem:[%s1587_s2 + $0x30] sm:$0xff] }
 0x20e   :  { %482 = vrot.lane.b32.xlu1 %v1167_v13, %s1226_s22  ;;  %226 = vrot.lane.b32.xlu0 %v169_v14, %s1225_s6 }
 0x20f   :  { %228 = vrot.lane.b32.xlu2 %v170_v15, %s1225_s6 }
 0x211   :  { %v304_v16 = vpop.permute.xlu2 %303 }
 0x212   :  { %v306_v17 = vmul.f32 0.0, %v304_v16  ;;  %v307_v18 = vmul.f32 %v304_v16, %v1365_v1  ;;  %v309_v19 = vmul.f32 %v304_v16, %v1367_v2  ;;  %v1137_v16 = vld [vmem:[%s1587_s2 + $0x28] sm:$0xff] }
 0x214   :  { %v313_v20 = vpack.c.bf16 %v306_v17, %v306_v17  ;;  %v314_v21 = vpack.c.bf16 %v309_v19, %v307_v18  ;;  %v1140_v17 = vld [vmem:[%s1587_s2 + $0x40] sm:$0xff] }
 0x216   :  { %322 = vrot.lane.b32.xlu1 %v313_v20, %s1224_s18  ;;  %324 = vrot.lane.b32.xlu0 %v314_v21, %s1224_s18  ;;  %v1139_v21 = vld [vmem:[%s1587_s2 + $0x38] sm:$0xff] }
 0x219   :  { %v255_v24 = vpop.permute.xlu2 %254 }
 0x21a   :  { %v257_v26 = vmul.f32 0.0, %v255_v24  ;;  %v258_v27 = vmul.f32 %v255_v24, %v1365_v1  ;;  %v260_v28 = vmul.f32 %v255_v24, %v1367_v2 }
 0x21c   :  { %v265_v29 = vpack.c.bf16 %v260_v28, %v258_v27  ;;  %v264_v31 = vpack.c.bf16 %v257_v26, %v257_v26 }
 0x21e   :  { %275 = vrot.lane.b32.xlu1 %v265_v29, %s1219_s21  ;;  %452 = vrot.lane.b32.xlu0 %v443_v30, %s1223_s1 }
 0x21f   :  { %273 = vrot.lane.b32.xlu2 %v264_v31, %s1219_s21 }
 0x221   :  { %v385_v33 = vpop.permute.xlu2 %384 }
 0x222   :  { %v387_v34 = vmul.f32 %v385_v33, %v1365_v1  ;;  %v388_v35 = vmul.f32 0.0, %v385_v33  ;;  %v389_v36 = vmul.f32 %v385_v33, %v1367_v2 }
 0x224   :  { %v394_v38 = vpack.c.bf16 %v389_v36, %v387_v34  ;;  %v395_v39 = vpack.c.bf16 %v388_v35, %v388_v35 }
 0x226   :  { %403 = vrot.lane.b32.xlu1 %v394_v38, %s1222_s13  ;;  %405 = vrot.lane.b32.xlu0 %v395_v39, %s1222_s13 }
 0x227   :  { %454 = vrot.lane.b32.xlu2 %v444_v37, %s1223_s1 }
 0x229   :  { %v532_v40 = vpop.permute.xlu2 %531 }
 0x22a   :  { %v534_v41 = vmul.f32 %v532_v40, %v1365_v1  ;;  %v535_v42 = vmul.f32 0.0, %v532_v40  ;;  %v536_v43 = vmul.f32 %v532_v40, %v1367_v2 }
 0x22c   :  { %v542_v44 = vpack.c.bf16 %v535_v42, %v535_v42  ;;  %v541_v45 = vpack.c.bf16 %v536_v43, %v534_v41 }
 0x22e   :  { %552 = vrot.lane.b32.xlu1 %v542_v44, %s1221_s30 }
 0x22f   :  { %550 = vrot.lane.b32.xlu2 %v541_v45, %s1221_s30  ;;  %s1026_s30 = sshll.u32 %s1596_s11, 4  ;;  %s1027_s30 = int_to_ptr.hbm [resolvable:$true] %s1026_s30 }
 0x269   :  { %v229_v50 = vpop.permute.xlu2 %228 }
 0x278   :  { %v195_v46 = vpop.permute.xlu1 %194  ;;  %v197_v47 = vpop.permute.xlu0 %196 }
 0x279   :  { %v199_v48 = vsel %vm198_vm7, %v195_v46, %v197_v47  ;;  %v274_v61 = vpop.permute.xlu2 %273 }
 0x27a   :  { %212 = vmatpush.bf16.msra.mxu1 %v199_v48 }
 0x27d   :  { %1050 = vmatmul.msk.bf16.vlgmr.msra.gmra.mxu1 %vm201_vm8, %v1133_v49 }
 0x280   :  { %v483_v51 = vpop.permute.xlu1 %482  ;;  %v227_v52 = vpop.permute.xlu0 %226 }
 0x281   :  { %v485_v54 = vmul.f32 %v483_v51, %v1365_v1  ;;  %v486_v55 = vmul.f32 0.0, %v483_v51  ;;  %v487_v56 = vmul.f32 %v483_v51, %v1367_v2  ;;  %v231_v57 = vsel %vm230_vm9, %v227_v52, %v229_v50  ;;  %v1135_v1 = vld [vmem:[%s1587_s2 + $0x18] sm:$0xff]  ;;  %v455_v2 = vpop.permute.xlu2 %454 }
 0x282   :  { %243 = vmatpush.bf16.msra.mxu2 %v231_v57 }
 0x283   :  { %v492_v59 = vpack.c.bf16 %v487_v56, %v485_v54  ;;  %v493_v60 = vpack.c.bf16 %v486_v55, %v486_v55 }
 0x285   :  { %501 = vrot.lane.b32.xlu0 %v492_v59, %s1220_s27  ;;  %503 = vrot.lane.b32.xlu2 %v493_v60, %s1220_s27 }
 0x286   :  { %367 = vmatpush.bf16.msrb.mxu2 %v351_v53 }
 0x287   :  { %1055 = vmatmul.msk.bf16.vlgmr.msra.gmra.mxu2 %vm201_vm8, %v1132_v58 }
 0x288   :  { %v323_v62 = vpop.permute.xlu1 %322  ;;  %v325_v63 = vpop.permute.xlu0 %324 }
 0x289   :  { %v327_v0 = vsel %vm326_vm10, %v323_v62, %v325_v63  ;;  %v551_v13 = vpop.permute.xlu2 %550 }
 0x28a   :  { %339 = vmatpush.bf16.msrb.mxu1 %v327_v0  ;;  %v578_v0 = vld [vmem:[%s1593_s8] sm:$0xff] }
 0x28d   :  { %1071 = vmatmul.msk.bf16.vlgmr.msrb.gmra.mxu1 %vm201_vm8, %v1135_v1 }
 0x290   :  { %v276_v3 = vpop.permute.xlu1 %275  ;;  %v453_v4 = vpop.permute.xlu0 %452 }
 0x291   :  { %v457_v5 = vsel %vm456_vm11, %v453_v4, %v455_v2  ;;  %v278_v6 = vsel %vm277_vm12, %v274_v61, %v276_v3 }
 0x292   :  { %290 = vmatpush.bf16.msra.mxu3 %v278_v6  ;;  %469 = vmatpush.bf16.msra.mxu1 %v457_v5 }
 0x295   :  { %1063 = vmatmul.msk.bf16.vlgmr.msra.gmra.mxu3 %vm201_vm8, %v1134_v7 }
 0x297   :  { %1078 = vmatmul.msk.bf16.vlgmr.msrb.gmra.mxu2 %vm201_vm8, %v1136_v8 }
 0x298   :  { %v404_v9 = vpop.permute.xlu1 %403  ;;  %v406_v10 = vpop.permute.xlu0 %405 }
 0x299   :  { %v408_v11 = vsel %vm407_vm13, %v404_v9, %v406_v10 }
 0x29a   :  { %420 = vmatpush.bf16.msrb.mxu3 %v408_v11 }
 0x29d   :  { %1094 = vmatmul.msk.bf16.vlgmr.msra.gmra.mxu1 %vm201_vm8, %v1138_v12 }
 0x2a0   :  { %v553_v14 = vpop.permute.xlu1 %552 }
 0x2a1   :  { %v555_v15 = vsel %vm554_vm14, %v551_v13, %v553_v14  ;;  %v576_v14 = vld [vmem:[%s1592_s7] sm:$0xff] }
 0x2a2   :  { %567 = vmatpush.bf16.msra.mxu2 %v555_v15 }
 0x2a5   :  { %1086 = vmatmul.msk.bf16.vlgmr.msrb.gmra.mxu3 %vm201_vm8, %v1137_v16 }
 0x2a7   :  { %1110 = vmatmul.msk.bf16.vlgmr.msra.gmra.mxu2 %vm201_vm8, %v1140_v17 }
 0x2df   :  { %v504_v18 = vpop.permute.xlu2 %503 }
 0x2f7   :  { %v502_v19 = vpop.permute.xlu0 %501 }
 0x2f8   :  { %v506_v20 = vsel %vm505_vm15, %v502_v19, %v504_v18 }
 0x2f9   :  { %518 = vmatpush.bf16.msrb.mxu1 %v506_v20 }
 0x2fa   :  { %v214_v22 = vpop.f32.mrf.mxu1 }
 0x2fc   :  { %1102 = vmatmul.msk.bf16.vlgmr.msrb.gmra.mxu1 %vm201_vm8, %v1139_v21  ;;  %v577_v21 = vld [vmem:[%s1592_s7 + $0x8] sm:$0xff] }
 0x302   :  { %v216_v23 = vpop.f32.mrf.mxu1 }
 0x30a   :  { %v245_v24 = vpop.f32.mrf.mxu2  ;;  %v341_v25 = vpop.f32.mrf.mxu1 }
 0x30b   :  { %v246_v29 = vadd.f32 %v245_v24, %v214_v22 }
 0x312   :  { %v247_v27 = vpop.f32.mrf.mxu2  ;;  %v343_v28 = vpop.f32.mrf.mxu1 }
 0x313   :  { %v248_v35 = vadd.f32 %v247_v27, %v216_v23 }
 0x318   :  { %v292_v26 = vpop.f32.mrf.mxu3 }
 0x319   :  { %v297_v33 = vadd.f32 %v292_v26, %v246_v29 }
 0x31a   :  { %v369_v31 = vpop.f32.mrf.mxu2  ;;  %v471_v32 = vpop.f32.mrf.mxu1 }
 0x31b   :  { %v346_v34 = vadd.f32 %v341_v25, %v297_v33  ;;  %v579_v25 = vld [vmem:[%s1593_s8 + $0x8] sm:$0xff] }
 0x31d   :  { %v374_v38 = vadd.f32 %v369_v31, %v346_v34 }
 0x320   :  { %v294_v30 = vpop.f32.mrf.mxu3 }
 0x321   :  { %v298_v37 = vadd.f32 %v294_v30, %v248_v35 }
 0x322   :  { %v371_v39 = vpop.f32.mrf.mxu2  ;;  %v473_v40 = vpop.f32.mrf.mxu1 }
 0x323   :  { %v347_v41 = vadd.f32 %v343_v28, %v298_v37  ;;  %v1141_v37 = vld [vmem:[%s1588_s3] sm:$0xff] }
 0x325   :  { %v375_v44 = vadd.f32 %v371_v39, %v347_v41  ;;  %v1142_v39 = vld [vmem:[%s1588_s3 + $0x8] sm:$0xff] }
 0x328   :  { %v422_v36 = vpop.f32.mrf.mxu3 }
 0x329   :  { %v427_v42 = vadd.f32 %v422_v36, %v374_v38  ;;  %v1143_v38 = vld [vmem:[%s1588_s3 + $0x10] sm:$0xff] }
 0x32a   :  { %v569_v46 = vpop.f32.mrf.mxu2 }
 0x32b   :  { %v476_v43 = vadd.f32 %v471_v32, %v427_v42 }
 0x330   :  { %v424_v45 = vpop.f32.mrf.mxu3 }
 0x331   :  { %v428_v49 = vadd.f32 %v424_v45, %v375_v44 }
 0x332   :  { %v571_v54 = vpop.f32.mrf.mxu2 }
 0x333   :  { %v477_v51 = vadd.f32 %v473_v40, %v428_v49  ;;  %v1144_v40 = vld [vmem:[%s1588_s3 + $0x18] sm:$0xff] }
 0x379   :  { %v520_v47 = vpop.f32.mrf.mxu1 }
 0x37a   :  { %v525_v48 = vadd.f32 %v520_v47, %v476_v43 }
 0x37c   :  { %v574_v50 = vadd.f32 %v569_v46, %v525_v48 }
 0x37e   :  { %580 = vadd.xlane.f32.xlu1 %v574_v50 }
 0x381   :  { %v522_v52 = vpop.f32.mrf.mxu1 }
 0x382   :  { %v526_v53 = vadd.f32 %v522_v52, %v477_v51 }
 0x384   :  { %v575_v55 = vadd.f32 %v571_v54, %v526_v53 }
 0x386   :  { %582 = vadd.xlane.f32.xlu0 %v575_v55 }
 0x3f1   :  { %v581_v56 = vpop.xlane.xlu1 %580 }
 0x3f2   :  { %v584_v57 = vmul.f32 0.0078125, %v581_v56 }
 0x3f4   :  { %v586_v58 = vsub.f32 %v574_v50, %v584_v57 }
 0x3f6   :  { %v588_v59 = vmul.f32 %v586_v58, %v586_v58 }
 0x3f8   :  { %590 = vadd.xlane.f32.xlu2 %v588_v59 }
 0x3f9   :  { %v583_v60 = vpop.xlane.xlu0 %582 }
 0x3fa   :  { %v585_v61 = vmul.f32 0.0078125, %v583_v60 }
 0x3fc   :  { %v587_v62 = vsub.f32 %v575_v55, %v585_v61 }
 0x3fe   :  { %v589_v63 = vmul.f32 %v587_v62, %v587_v62 }
 0x400   :  { %592 = vadd.xlane.f32.xlu1 %v589_v63 }
 0x419   :  { %634 = vperm.xlu1 %1158, %v578_v0  }
 0x46b   :  { %v591_v1 = vpop.xlane.xlu2 %590 }
 0x46c   :  { %v594_v2 = vmul.f32 0.0078125, %v591_v1 }
 0x46e   :  { %v596_v3 = vadd.f32 1e-05, %v594_v2 }
 0x470   :  { %1172 = vrsqrt.f32 %v596_v3  ;;  %vm604_vm1 = vweird.f32 %v596_v3 }
 0x473   :  { %v593_v4 = vpop.xlane.xlu1 %592 }
 0x474   :  { %v595_v5 = vmul.f32 0.0078125, %v593_v4 }
 0x476   :  { %v1173_v6 = vpop.eup %1172  ;;  %v597_v7 = vadd.f32 1e-05, %v595_v5 }
 0x477   :  { %v599_v8 = vmul.f32 %v1173_v6, %v596_v3  ;;  %vm605_vm0 = vweird.f32 %v1173_v6 }
 0x478   :  { %1174 = vrsqrt.f32 %v597_v7  ;;  %vm606_vm2 = vmor %vm604_vm1, %vm605_vm0  ;;  %vm614_vm4 = vweird.f32 %v597_v7 }
 0x479   :  { %v600_v9 = vmul.f32 %v1173_v6, %v599_v8 }
 0x47b   :  { %v601_v10 = vmul.f32 0.5, %v600_v9 }
 0x47d   :  { %v602_v11 = vsub.f32 1.5, %v601_v10 }
 0x47e   :  { %v1175_v12 = vpop.eup %1174 }
 0x47f   :  { %v609_v13 = vmul.f32 %v1175_v12, %v597_v7  ;;  %v603_v15 = vmul.f32 %v1173_v6, %v602_v11  ;;  %vm615_vm3 = vweird.f32 %v1175_v12 }
 0x480   :  { %vm616_vm5 = vmor %vm614_vm4, %vm615_vm3 }
 0x481   :  { %v610_v16 = vmul.f32 %v1175_v12, %v609_v13  ;;  %v607_v17 = vsel %vm606_vm2, %v1173_v6, %v603_v15 }
 0x482   :  { %v618_v18 = vmul.f32 %v607_v17, %v576_v14  ;;  %v724_v17 = vld [vmem:[%s1595_s10] sm:$0xff] }
 0x483   :  { %v611_v19 = vmul.f32 0.5, %v610_v16 }
 0x484   :  { %622 = vperm.xlu2 %1159, %v618_v18   ;;  %v726_v18 = vld [vmem:[%s1595_s10 + $0x10] sm:$0xff] }
 0x485   :  { %v612_v20 = vsub.f32 1.5, %v611_v19  ;;  %v725_v19 = vld [vmem:[%s1595_s10 + $0x8] sm:$0xff] }
 0x487   :  { %v613_v22 = vmul.f32 %v1175_v12, %v612_v20  ;;  %v727_v20 = vld [vmem:[%s1595_s10 + $0x18] sm:$0xff] }
 0x489   :  { %v617_v23 = vsel %vm616_vm5, %v1175_v12, %v613_v22 }
 0x48a   :  { %v619_v24 = vmul.f32 %v617_v23, %v577_v21  ;;  %v728_v21 = vld [vmem:[%s1595_s10 + $0x20] sm:$0xff] }
 0x48b   :  { %v635_v29 = vpop.permute.xlu1 %634 }
 0x48c   :  { %627 = vperm.xlu0 %1157, %v619_v24  }
 0x494   :  { %639 = vperm.xlu0 %1157, %v579_v25  }
 0x4de   :  { %v623_v26 = vpop.permute.xlu2 %622 }
 0x4df   :  { %v630_v28 = vmul.f32 %v623_v26, %v586_v58 }
 0x4e1   :  { %v642_v30 = vadd.f32 %v635_v29, %v630_v28 }
 0x4e3   :  { %v644_v34 = vmax.f32 %v642_v30, 0.0 }
 0x4fe   :  { %v628_v27 = vpop.permute.xlu0 %627 }
 0x4ff   :  { %v631_v31 = vmul.f32 %v628_v27, %v587_v62 }
 0x506   :  { %v640_v32 = vpop.permute.xlu0 %639 }
 0x507   :  { %v643_v33 = vadd.f32 %v640_v32, %v631_v31 }
 0x509   :  { %v645_v35 = vmax.f32 %v643_v33, 0.0 }
 0x50b   :  { %v654_v36 = vpack.c.bf16 %v645_v35, %v644_v34 }
 0x50d   :  { %694 = vmatpush.bf16.msrb.mxu0 %v654_v36  ;;  %1145 = vmatpush.bf16.msra.mxu3 %v654_v36 }
 0x510   :  { %1127 = vmatmul.msk.bf16.vlgmr.msrb.gmra.mxu0 %vm201_vm8, %v1141_v37  ;;  %1129 = vmatmul.msk.bf16.vlgmr.msra.gmra.mxu3 %vm201_vm8, %v1143_v38 }
 0x520   :  { %1128 = vmatmul.msk.bf16.gmra.mxu0 %vm201_vm8, %v1142_v39  ;;  %1130 = vmatmul.msk.bf16.gmra.mxu3 %vm201_vm8, %v1144_v40  ;;  %v716_v39 = vld [vmem:[%s1594_s9] sm:$0xff] }
 0x58d   :  { %v696_v41 = vpop.f32.mrf.mxu0 }
 0x58e   :  { %732 = vadd.xlane.f32.xlu2 %v696_v41 }
 0x593   :  { %v706_v42 = vpop.f32.mrf.mxu3 }
 0x594   :  { %740 = vadd.xlane.f32.xlu1 %v706_v42 }
 0x595   :  { %v698_v43 = vpop.f32.mrf.mxu0 }
 0x59b   :  { %v708_v44 = vpop.f32.mrf.mxu3 }
 0x59c   :  { %734 = vadd.xlane.f32.xlu1 %v698_v43 }
 0x59d   :  { %v701_v45 = vpop.f32.mrf.mxu0 }
 0x59e   :  { %736 = vadd.xlane.f32.xlu0 %v701_v45 }
 0x5a3   :  { %v711_v46 = vpop.f32.mrf.mxu3 }
 0x5a5   :  { %v703_v47 = vpop.f32.mrf.mxu0 }
 0x5a6   :  { %742 = vadd.xlane.f32.xlu0 %v708_v44  ;;  %738 = vadd.xlane.f32.xlu2 %v703_v47 }
 0x5ab   :  { %v713_v48 = vpop.f32.mrf.mxu3 }
 0x5ac   :  { %746 = vadd.xlane.f32.xlu1 %v713_v48 }
 0x5ae   :  { %744 = vadd.xlane.f32.xlu2 %v711_v46 }
 0x601   :  { %v733_v49 = vpop.xlane.xlu2 %732 }
 0x602   :  { %v748_v50 = vmul.f32 0.0078125, %v733_v49 }
 0x604   :  { %v1469_v51 = vsub.f32 %v696_v41, %v748_v50 }
 0x606   :  { %v764_v52 = vmul.f32 %v1469_v51, %v1469_v51 }
 0x607   :  { %v741_v53 = vpop.xlane.xlu1 %740 }
 0x608   :  { %v752_v54 = vmul.f32 0.0078125, %v741_v53  ;;  %772 = vadd.xlane.f32.xlu0 %v764_v52  ;;  %v720_v53 = vld [vmem:[%s1594_s9 + $0x20] sm:$0xff] }
 0x60a   :  { %v1473_v55 = vsub.f32 %v706_v42, %v752_v54 }
 0x60c   :  { %v768_v56 = vmul.f32 %v1473_v55, %v1473_v55 }
 0x60e   :  { %780 = vadd.xlane.f32.xlu2 %v768_v56 }
 0x60f   :  { %v735_v57 = vpop.xlane.xlu1 %734 }
 0x610   :  { %v749_v58 = vmul.f32 0.0078125, %v735_v57 }
 0x611   :  { %v737_v59 = vpop.xlane.xlu0 %736 }
 0x612   :  { %v1477_v60 = vsub.f32 %v698_v43, %v749_v58  ;;  %v750_v2 = vmul.f32 0.0078125, %v737_v59 }
 0x614   :  { %v765_v61 = vmul.f32 %v1477_v60, %v1477_v60  ;;  %v1485_v7 = vsub.f32 %v701_v45, %v750_v2 }
 0x616   :  { %774 = vadd.xlane.f32.xlu2 %v765_v61  ;;  %v766_v13 = vmul.f32 %v1485_v7, %v1485_v7 }
 0x619   :  { %v743_v62 = vpop.xlane.xlu0 %742  ;;  %v739_v63 = vpop.xlane.xlu2 %738 }
 0x61a   :  { %v753_v0 = vmul.f32 0.0078125, %v743_v62  ;;  %v751_v12 = vmul.f32 0.0078125, %v739_v63 }
 0x61c   :  { %v1481_v1 = vsub.f32 %v708_v44, %v753_v0  ;;  %v1497_v15 = vsub.f32 %v703_v47, %v751_v12 }
 0x61e   :  { %v769_v3 = vmul.f32 %v1481_v1, %v1481_v1  ;;  %v767_v16 = vmul.f32 %v1497_v15, %v1497_v15 }
 0x61f   :  { %v747_v4 = vpop.xlane.xlu1 %746 }
 0x620   :  { %v755_v5 = vmul.f32 0.0078125, %v747_v4  ;;  %782 = vadd.xlane.f32.xlu1 %v769_v3  ;;  %v717_v4 = vld [vmem:[%s1594_s9 + $0x8] sm:$0xff] }
 0x621   :  { %v745_v6 = vpop.xlane.xlu2 %744 }
 0x622   :  { %v1487_v8 = vsub.f32 %v713_v48, %v755_v5  ;;  %v754_v9 = vmul.f32 0.0078125, %v745_v6 }
 0x624   :  { %v1489_v10 = vsub.f32 %v711_v46, %v754_v9  ;;  %v771_v11 = vmul.f32 %v1487_v8, %v1487_v8 }
 0x626   :  { %786 = vadd.xlane.f32.xlu2 %v771_v11  ;;  %v770_v14 = vmul.f32 %v1489_v10, %v1489_v10 }
 0x628   :  { %776 = vadd.xlane.f32.xlu1 %v766_v13  ;;  %784 = vadd.xlane.f32.xlu0 %v770_v14 }
 0x630   :  { %778 = vadd.xlane.f32.xlu0 %v767_v16 }
 0x63e   :  { %942 = vperm.xlu2 %1159, %v724_v17  }
 0x641   :  { %952 = vperm.xlu1 %1158, %v726_v18  }
 0x644   :  { %947 = vperm.xlu0 %1157, %v725_v19  }
 0x646   :  { %957 = vperm.xlu2 %1159, %v727_v20  }
 0x64c   :  { %962 = vperm.xlu0 %1157, %v728_v21  }
 0x67b   :  { %v773_v22 = vpop.xlane.xlu0 %772 }
 0x67c   :  { %v788_v23 = vmul.f32 0.0078125, %v773_v22 }
 0x67e   :  { %v796_v24 = vadd.f32 1e-05, %v788_v23 }
 0x680   :  { %1176 = vrsqrt.f32 %v796_v24  ;;  %vm810_vm7 = vweird.f32 %v796_v24 }
 0x681   :  { %v781_v25 = vpop.xlane.xlu2 %780 }
 0x682   :  { %v792_v26 = vmul.f32 0.0078125, %v781_v25 }
 0x684   :  { %v800_v27 = vadd.f32 1e-05, %v792_v26 }
 0x686   :  { %v1177_v28 = vpop.eup %1176  ;;  %1178 = vrsqrt.f32 %v800_v27  ;;  %vm850_vm10 = vweird.f32 %v800_v27 }
 0x687   :  { %v805_v29 = vmul.f32 %v1177_v28, %v796_v24  ;;  %vm811_vm6 = vweird.f32 %v1177_v28 }
 0x688   :  { %vm812_vm8 = vmor %vm810_vm7, %vm811_vm6 }
 0x689   :  { %v806_v30 = vmul.f32 %v1177_v28, %v805_v29  ;;  %v775_v31 = vpop.xlane.xlu2 %774 }
 0x68a   :  { %v789_v32 = vmul.f32 0.0078125, %v775_v31 }
 0x68b   :  { %v807_v33 = vmul.f32 0.5, %v806_v30 }
 0x68c   :  { %v1179_v34 = vpop.eup %1178  ;;  %v797_v35 = vadd.f32 1e-05, %v789_v32 }
 0x68d   :  { %v808_v36 = vsub.f32 1.5, %v807_v33  ;;  %v845_v37 = vmul.f32 %v1179_v34, %v800_v27  ;;  %vm851_vm9 = vweird.f32 %v1179_v34 }
 0x68e   :  { %1180 = vrsqrt.f32 %v797_v35  ;;  %vm852_vm11 = vmor %vm850_vm10, %vm851_vm9  ;;  %vm820_vm13 = vweird.f32 %v797_v35 }
 0x68f   :  { %v846_v38 = vmul.f32 %v1179_v34, %v845_v37  ;;  %v809_v40 = vmul.f32 %v1177_v28, %v808_v36 }
 0x691   :  { %v847_v41 = vmul.f32 0.5, %v846_v38  ;;  %v813_v42 = vsel %vm812_vm8, %v1177_v28, %v809_v40  ;;  %v721_v28 = vld [vmem:[%s1594_s9 + $0x28] sm:$0xff]  ;;  %v723_v40 = vld [vmem:[%s1594_s9 + $0x38] sm:$0xff] }
 0x692   :  { %v884_v43 = vmul.f32 %v813_v42, %v716_v39 }
 0x693   :  { %v848_v44 = vsub.f32 1.5, %v847_v41  ;;  %v783_v45 = vpop.xlane.xlu1 %782 }
 0x694   :  { %v1181_v46 = vpop.eup %1180  ;;  %v793_v47 = vmul.f32 0.0078125, %v783_v45  ;;  %894 = vperm.xlu1 %1158, %v884_v43  }
 0x695   :  { %v815_v48 = vmul.f32 %v1181_v46, %v797_v35  ;;  %v849_v49 = vmul.f32 %v1179_v34, %v848_v44  ;;  %vm821_vm12 = vweird.f32 %v1181_v46 }
 0x696   :  { %v801_v50 = vadd.f32 1e-05, %v793_v47  ;;  %vm822_vm14 = vmor %vm820_vm13, %vm821_vm12 }
 0x697   :  { %v816_v52 = vmul.f32 %v1181_v46, %v815_v48  ;;  %v853_v54 = vsel %vm852_vm11, %v1179_v34, %v849_v49  ;;  %v722_v49 = vld [vmem:[%s1594_s9 + $0x30] sm:$0xff] }
 0x698   :  { %1182 = vrsqrt.f32 %v801_v50  ;;  %v888_v59 = vmul.f32 %v853_v54, %v720_v53  ;;  %vm860_vm0 = vweird.f32 %v801_v50 }
 0x699   :  { %v817_v56 = vmul.f32 0.5, %v816_v52  ;;  %v787_v57 = vpop.xlane.xlu2 %786 }
 0x69a   :  { %v795_v58 = vmul.f32 0.0078125, %v787_v57 }
 0x69b   :  { %v818_v61 = vsub.f32 1.5, %v817_v56  ;;  %v777_v62 = vpop.xlane.xlu1 %776  ;;  %v785_v63 = vpop.xlane.xlu0 %784 }
 0x69c   :  { %v803_v0 = vadd.f32 1e-05, %v795_v58  ;;  %v790_v2 = vmul.f32 0.0078125, %v777_v62  ;;  %v794_v3 = vmul.f32 0.0078125, %v785_v63  ;;  %914 = vperm.xlu1 %1158, %v888_v59   ;;  %v719_v62 = vld [vmem:[%s1594_s9 + $0x18] sm:$0xff] }
 0x69d   :  { %v819_v5 = vmul.f32 %v1181_v46, %v818_v61  ;;  %v729_v61 = vld [vmem:[%s1595_s10 + $0x28] sm:$0xff] }
 0x69e   :  { %v1183_v6 = vpop.eup %1182  ;;  %1184 = vrsqrt.f32 %v803_v0  ;;  %v798_v9 = vadd.f32 1e-05, %v790_v2  ;;  %v802_v11 = vadd.f32 1e-05, %v794_v3  ;;  %vm880_vm3 = vweird.f32 %v803_v0 }
 0x69f   :  { %v855_v12 = vmul.f32 %v1183_v6, %v801_v50  ;;  %v823_v13 = vsel %vm822_vm14, %v1181_v46, %v819_v5  ;;  %vm861_vm15 = vweird.f32 %v1183_v6  ;;  %v718_v46 = vld [vmem:[%s1594_s9 + $0x10] sm:$0xff] }
 0x6a0   :  { %1186 = vrsqrt.f32 %v798_v9  ;;  %v885_v14 = vmul.f32 %v823_v13, %v717_v4  ;;  %vm862_vm1 = vmor %vm860_vm0, %vm861_vm15  ;;  %vm830_vm7 = vweird.f32 %v798_v9  ;;  %vm870_vm9 = vweird.f32 %v802_v11  ;;  %v731_v4 = vld [vmem:[%s1595_s10 + $0x38] sm:$0xff] }
 0x6a1   :  { %v856_v16 = vmul.f32 %v1183_v6, %v855_v12  ;;  %1188 = vrsqrt.f32 %v802_v11  ;;  %v943_v5 = vpop.permute.xlu2 %942 }
 0x6a2   :  { %899 = vperm.xlu0 %1157, %v885_v14  }
 0x6a3   :  { %v857_v17 = vmul.f32 0.5, %v856_v16  ;;  %v779_v18 = vpop.xlane.xlu0 %778  ;;  %v988_v16 = vld [vmem:[%s1585_s0] sm:$0xff] }
 0x6a4   :  { %v1185_v19 = vpop.eup %1184  ;;  %v791_v20 = vmul.f32 0.0078125, %v779_v18 }
 0x6a5   :  { %v858_v21 = vsub.f32 1.5, %v857_v17  ;;  %v875_v22 = vmul.f32 %v1185_v19, %v803_v0  ;;  %vm881_vm2 = vweird.f32 %v1185_v19  ;;  %v730_v0 = vld [vmem:[%s1595_s10 + $0x30] sm:$0xff] }
 0x6a6   :  { %v1187_v23 = vpop.eup %1186  ;;  %v799_v24 = vadd.f32 1e-05, %v791_v20  ;;  %vm882_vm5 = vmor %vm880_vm3, %vm881_vm2 }
 0x6a7   :  { %v1189_v25 = vpop.eup %1188  ;;  %v876_v26 = vmul.f32 %v1185_v19, %v875_v22  ;;  %v825_v27 = vmul.f32 %v1187_v23, %v798_v9  ;;  %v859_v29 = vmul.f32 %v1183_v6, %v858_v21  ;;  %vm831_vm4 = vweird.f32 %v1187_v23 }
 0x6a8   :  { %v865_v30 = vmul.f32 %v1189_v25, %v802_v11  ;;  %1190 = vrsqrt.f32 %v799_v24  ;;  %vm871_vm6 = vweird.f32 %v1189_v25  ;;  %vm832_vm8 = vmor %vm830_vm7, %vm831_vm4  ;;  %vm840_vm12 = vweird.f32 %v799_v24 }
 0x6a9   :  { %v877_v31 = vmul.f32 0.5, %v876_v26  ;;  %v826_v32 = vmul.f32 %v1187_v23, %v825_v27  ;;  %v863_v33 = vsel %vm862_vm1, %v1183_v6, %v859_v29  ;;  %vm872_vm10 = vmor %vm870_vm9, %vm871_vm6  ;;  %v958_v6 = vpop.permute.xlu2 %957 }
 0x6aa   :  { %v866_v34 = vmul.f32 %v1189_v25, %v865_v30  ;;  %v889_v35 = vmul.f32 %v863_v33, %v721_v28 }
 0x6ab   :  { %v878_v36 = vsub.f32 1.5, %v877_v31  ;;  %v827_v37 = vmul.f32 0.5, %v826_v32 }
 0x6ac   :  { %v867_v38 = vmul.f32 0.5, %v866_v34  ;;  %919 = vperm.xlu2 %1159, %v889_v35  }
 0x6ad   :  { %v828_v39 = vsub.f32 1.5, %v827_v37  ;;  %v879_v41 = vmul.f32 %v1185_v19, %v878_v36 }
 0x6ae   :  { %v1191_v42 = vpop.eup %1190  ;;  %v868_v43 = vsub.f32 1.5, %v867_v38 }
 0x6af   :  { %v835_v44 = vmul.f32 %v1191_v42, %v799_v24  ;;  %v883_v45 = vsel %vm882_vm5, %v1185_v19, %v879_v41  ;;  %v829_v47 = vmul.f32 %v1187_v23, %v828_v39  ;;  %vm841_vm11 = vweird.f32 %v1191_v42 }
 0x6b0   :  { %v891_v48 = vmul.f32 %v883_v45, %v723_v40  ;;  %v869_v50 = vmul.f32 %v1189_v25, %v868_v43  ;;  %vm842_vm13 = vmor %vm840_vm12, %vm841_vm11  ;;  %v994_v40 = vld [vmem:[%s1585_s0 + $0x30] sm:$0xff]  ;;  %v993_v43 = vld [vmem:[%s1585_s0 + $0x28] sm:$0xff] }
 0x6b1   :  { %v836_v52 = vmul.f32 %v1191_v42, %v835_v44  ;;  %v833_v53 = vsel %vm832_vm8, %v1187_v23, %v829_v47 }
 0x6b2   :  { %929 = vperm.xlu1 %1158, %v891_v48   ;;  %v886_v54 = vmul.f32 %v833_v53, %v718_v46  ;;  %v873_v56 = vsel %vm872_vm10, %v1189_v25, %v869_v50  ;;  %v992_v25 = vld [vmem:[%s1585_s0 + $0x20] sm:$0xff]  ;;  %v991_v50 = vld [vmem:[%s1585_s0 + $0x18] sm:$0xff] }
 0x6b3   :  { %v837_v57 = vmul.f32 0.5, %v836_v52  ;;  %v890_v58 = vmul.f32 %v873_v56, %v722_v49  ;;  %v953_v9 = vpop.permute.xlu1 %952  ;;  %v995_v56 = vld [vmem:[%s1585_s0 + $0x38] sm:$0xff] }
 0x6b4   :  { %904 = vperm.xlu2 %1159, %v886_v54  }
 0x6b5   :  { %v838_v59 = vsub.f32 1.5, %v837_v57  ;;  %924 = vperm.xlu0 %1157, %v890_v58  }
 0x6b6   :  { %v948_v11 = vpop.permute.xlu0 %947 }
 0x6b7   :  { %v839_v63 = vmul.f32 %v1191_v42, %v838_v59 }
 0x6b9   :  { %v843_v2 = vsel %vm842_vm13, %v1191_v42, %v839_v63 }
 0x6ba   :  { %967 = vperm.xlu1 %1158, %v729_v61   ;;  %v887_v3 = vmul.f32 %v843_v2, %v719_v62 }
 0x6bc   :  { %972 = vperm.xlu2 %1159, %v730_v0  }
 0x6bd   :  { %909 = vperm.xlu0 %1157, %v887_v3  }
 0x6be   :  { %v963_v19 = vpop.permute.xlu0 %962 }
 0x6c5   :  { %977 = vperm.xlu0 %1157, %v731_v4  }
 0x706   :  { %v895_v12 = vpop.permute.xlu1 %894  ;;  %v920_v13 = vpop.permute.xlu2 %919 }
 0x707   :  { %v932_v14 = vmul.f32 %v895_v12, %v1469_v51  ;;  %v990_v51 = vld [vmem:[%s1585_s0 + $0x10] sm:$0xff]  ;;  %v937_v41 = vmul.f32 %v920_v13, %v1481_v1 }
 0x709   :  { %v980_v17 = vadd.f32 %v943_v5, %v932_v14 }
 0x70b   :  { %v996_v18 = vadd.f32 %v988_v16, %v980_v17 }
 0x70d   :  { %v1004_v20 = vmax.f32 %v996_v18, 0.0 }
 0x70e   :  { %v915_v21 = vpop.permute.xlu1 %914  ;;  %v905_v22 = vpop.permute.xlu2 %904 }
 0x70f   :  { %1012 = vst [vmem:[#allocation3] sm:$0xff] %v1004_v20  ;;  %v936_v23 = vmul.f32 %v915_v21, %v1473_v55  ;;  %v934_v24 = vmul.f32 %v905_v22, %v1485_v7  ;;  %v989_v55 = vld [vmem:[%s1585_s0 + $0x8] sm:$0xff] }
 0x711   :  { %v984_v26 = vadd.f32 %v963_v19, %v936_v23  ;;  %v982_v27 = vadd.f32 %v953_v9, %v934_v24 }
 0x713   :  { %v1000_v28 = vadd.f32 %v992_v25, %v984_v26  ;;  %v998_v29 = vadd.f32 %v990_v51, %v982_v27 }
 0x714   :  { %v900_v30 = vpop.permute.xlu0 %899 }
 0x715   :  { %v1008_v31 = vmax.f32 %v1000_v28, 0.0  ;;  %v1006_v32 = vmax.f32 %v998_v29, 0.0  ;;  %v933_v33 = vmul.f32 %v900_v30, %v1477_v60 }
 0x716   :  { %v973_v39 = vpop.permute.xlu2 %972 }
 0x717   :  { %1016 = vst [vmem:[#allocation3 + $0x20] sm:$0xff] %v1008_v31  ;;  %v981_v7 = vadd.f32 %v948_v11, %v933_v33 }
 0x718   :  { %1014 = vst [vmem:[#allocation3 + $0x10] sm:$0xff] %v1006_v32 }
 0x719   :  { %v997_v34 = vadd.f32 %v989_v55, %v981_v7 }
 0x71b   :  { %v1005_v35 = vmax.f32 %v997_v34, 0.0 }
 0x71d   :  { %1013 = vst [vmem:[#allocation3 + $0x8] sm:$0xff] %v1005_v35 }
 0x724   :  { %v930_v36 = vpop.permute.xlu1 %929 }
 0x725   :  { %v939_v53 = vmul.f32 %v930_v36, %v1487_v8 }
 0x727   :  { %v925_v37 = vpop.permute.xlu0 %924 }
 0x728   :  { %v938_v38 = vmul.f32 %v925_v37, %v1489_v10 }
 0x72a   :  { %v986_v60 = vadd.f32 %v973_v39, %v938_v38 }
 0x72c   :  { %v1002_v42 = vadd.f32 %v994_v40, %v986_v60  ;;  %v968_v44 = vpop.permute.xlu1 %967 }
 0x72d   :  { %v985_v45 = vadd.f32 %v968_v44, %v937_v41 }
 0x72e   :  { %v1010_v46 = vmax.f32 %v1002_v42, 0.0 }
 0x72f   :  { %v1001_v47 = vadd.f32 %v993_v43, %v985_v45  ;;  %v910_v48 = vpop.permute.xlu0 %909 }
 0x730   :  { %1018 = vst [vmem:[#allocation3 + $0x30] sm:$0xff] %v1010_v46  ;;  %v935_v10 = vmul.f32 %v910_v48, %v1497_v15 }
 0x731   :  { %v1009_v49 = vmax.f32 %v1001_v47, 0.0 }
 0x732   :  { %v983_v52 = vadd.f32 %v958_v6, %v935_v10 }
 0x733   :  { %1017 = vst [vmem:[#allocation3 + $0x28] sm:$0xff] %v1009_v49 }
 0x734   :  { %v999_v1 = vadd.f32 %v991_v50, %v983_v52 }
 0x736   :  { %v1007_v54 = vmax.f32 %v999_v1, 0.0 }
 0x737   :  { %v978_v57 = vpop.permute.xlu0 %977 }
 0x738   :  { %1015 = vst [vmem:[#allocation3 + $0x18] sm:$0xff] %v1007_v54  ;;  %v987_v58 = vadd.f32 %v978_v57, %v939_v53 }
 0x73a   :  { %v1003_v15 = vadd.f32 %v995_v56, %v987_v58 }
 0x73c   :  { %v1011_v59 = vmax.f32 %v1003_v15, 0.0 }
 0x73e   :  { %1019 = vst [vmem:[#allocation3 + $0x38] sm:$0xff] %v1011_v59 }
 0x73f   :  { %1032 = dma.vmem_to_hbm [thread:$0]  %s1025_s29, 1024, %s1027_s30, [#allocation4], %s1228_s5, %s1228_s5, %s1226_s22  }
 0x740   :  { %1216 = dma.done.wait [#allocation4], 1024  }
 0x741   :  { %1217 = vsyncadd [#allocation4], 4294966272 }
 0x742   :  { %1037 = vsyncpa [#allocation4], 1 }

</bundles_post_ra>
